<compile_context>
chip_gen: v7x
topology: tpu7x:2x2x1
jax: 0.10.0
libtpu: 0.0.40
codegen_flags: <defaults>
</compile_context>

<pallas_src>
import functools
import math

import jax
import jax.numpy as jnp
from jax.experimental import pallas as pl
from jax.experimental.pallas import tpu as pltpu


def _bilstm_head_kernel(x_ref,
                        wih_f_ref, whh_f_ref, b_f_ref,
                        wih_b_ref, b_b_ref,
                        wfc_f_ref, wfc_b_ref, bfc_ref,
                        wout_ref, bout_ref,
                        o_ref,
                        *, matmul_dtype):
    T, B, I = x_ref.shape                       # time-major input
    H4 = whh_f_ref.shape[-1]
    H = H4 // 4
    mm = matmul_dtype
    f32 = jnp.float32

    x = x_ref[...]                               # (T, B, I), whole-array VMEM
    x2d = x.reshape(T * B, I).astype(mm)         # merge leading dims (no relayout)

    # ---- Hoisted input projection: ONE packed matmul for all timesteps.
    # Result is (T*B, 4H) with 4H = 128 -> lane-dense, exactly fills vregs.
    # Bias add hoisted out of the recurrence as well.  Gate order: [i, f, o, g].
    gates_in = jnp.dot(x2d, wih_f_ref[...].astype(mm),
                       preferred_element_type=f32) + b_f_ref[...]   # (T*B, 4H) f32

    whh = whh_f_ref[...].astype(mm)              # (H, 4H) held resident all T steps

    # ---- Forward recurrence: one (B,H)x(H,4H) matmul + 3 EUP pushes per step.
    # T is a trace-time constant, fully unrolled, so every slice is static
    # (cheap in-vreg selects).  For large T, chunk time into a grid instead.
    h = jnp.zeros((B, H), f32)
    c = jnp.zeros((B, H), f32)
    for t in range(T):
        pre = gates_in[t * B:(t + 1) * B, :] + jnp.dot(
            h.astype(mm), whh, preferred_element_type=f32)          # (B, 4H)
        sig = jax.nn.sigmoid(pre[:, :3 * H])     # i, f, o in ONE EUP pass
        g = jnp.tanh(pre[:, 3 * H:])
        i_g = sig[:, :H]
        f_g = sig[:, H:2 * H]
        o_g = sig[:, 2 * H:]
        c = f_g * c + i_g * g
        h = o_g * jnp.tanh(c)

    # ---- Reverse direction: single cell step on x_{T-1} from zero state.
    # h0 == 0 -> no W_hh_b matmul; c0 == 0 -> forget-gate term vanishes.
    x_last = x[T - 1].astype(mm)                 # (B, I), contiguous time-major slice
    pre_b = jnp.dot(x_last, wih_b_ref[...].astype(mm),
                    preferred_element_type=f32) + b_b_ref[...]      # (B, 4H)
    sig_b = jax.nn.sigmoid(pre_b[:, :3 * H])     # i, f, o in one pass (f unused)
    g_b = jnp.tanh(pre_b[:, 3 * H:])
    c_b = sig_b[:, :H] * g_b
    h_b = sig_b[:, 2 * H:] * jnp.tanh(c_b)

    # ---- Head: fc -> relu -> (dropout: eval identity) -> fc_out.
    # fc weight split into forward/backward halves -> two summed matmuls
    # instead of a lane-dim concatenate of [h_fwd, h_bwd].
    hid = (jnp.dot(h.astype(mm), wfc_f_ref[...].astype(mm), preferred_element_type=f32)
           + jnp.dot(h_b.astype(mm), wfc_b_ref[...].astype(mm), preferred_element_type=f32)
           + bfc_ref[...])
    hid = jnp.maximum(hid, 0.0)
    # TODO(synk): nn.Dropout is identity in eval mode; no stochastic mask emitted.
    out = jnp.dot(hid.astype(mm), wout_ref[...].astype(mm),
                  preferred_element_type=f32) + bout_ref[...]
    o_ref[...] = out.astype(o_ref.dtype)


def bilstm_forward(x_btf, params, *, matmul_dtype=jnp.float32):
    """x_btf: (B, T, I) float32, batch-first as in the PyTorch module.

    matmul_dtype=jnp.bfloat16 gives MXU-native operands on v5e/v6e/v7x (all
    generations have bf16-native MXUs); elementwise gate/state math stays f32
    either way.  Note: with bf16 the T-step recurrence accumulates operand
    rounding, so loosen tolerances for long T / large H, or keep f32 (default)
    when accuracy-sensitive.
    """
    B, T, I = x_btf.shape
    H = params["whh_f"].shape[0]
    fc_hidden = params["wfc_f"].shape[-1]
    out_size = params["wout"].shape[-1]

    # Time-major x: HBM-side transpose in the wrapper so the per-step read in
    # the recurrence is a contiguous static sublane block.
    x_tbf = jnp.transpose(x_btf, (1, 0, 2))      # (T, B, I)

    kernel = functools.partial(_bilstm_head_kernel, matmul_dtype=matmul_dtype)

    args = (x_tbf,
            params["wih_f"], params["whh_f"], params["b_f"],
            params["wih_b"], params["b_b"],
            params["wfc_f"], params["wfc_b"], params["bfc"],
            params["wout"], params["bout"])

    # Explicit VMEM residency for every operand (one up-front DMA each; no
    # ANY-space surprises).  No grid: everything fits whole in VMEM, so the
    # recurrence has zero per-timestep pipeline/DMA overhead.
    vmem_spec = pl.BlockSpec(memory_space=pltpu.MemorySpace.VMEM)

    # Advisory cost estimate so XLA schedules around this latency-bound kernel.
    flops = 2 * (T * B * I * 4 * H        # hoisted input projection (fwd)
                 + T * B * H * 4 * H      # recurrence h @ W_hh
                 + B * I * 4 * H          # reverse single step
                 + 2 * B * H * fc_hidden  # fc (split halves)
                 + B * fc_hidden * out_size)
    transcendentals = (T + 1) * B * 6 * H
    operand_bytes = (sum(int(a.size) * a.dtype.itemsize for a in args)
                     + B * out_size * 4)

    # VMEM budget from actual buffer sizes (operands + the (T*B, 4H) f32 gate
    # slab and packed pre-activations), with generous headroom; floor well
    # below any generation's physical VMEM (incl. v7x's 64 MiB).
    working_set = operand_bytes + T * B * 4 * H * 4
    vmem_budget = int(max(8 * working_set, 16 * 1024 * 1024))

    fn = pl.pallas_call(
        kernel,
        out_shape=jax.ShapeDtypeStruct((B, out_size), jnp.float32),
        in_specs=[vmem_spec] * len(args),
        out_specs=vmem_spec,
        cost_estimate=pl.CostEstimate(flops=flops,
                                      transcendentals=transcendentals,
                                      bytes_accessed=operand_bytes),
        compiler_params=pltpu.CompilerParams(vmem_limit_bytes=vmem_budget),
    )
    # NOTE(v7x): when B grows, add a "parallel" batch-tile grid axis so the
    # second TensorCore is used; this gridless call runs on one TC.
    return fn(*args)


def init_params(key, input_size, hidden_size, fc_hidden=64, output_size=1):
    """Deterministic synthetic init matching PyTorch parameter shapes,
    converted to the kernel-facing packed-gate layout [i, f, o, g]."""
    ks = jax.random.split(key, 12)

    def u(k, shape, scale):
        return jax.random.uniform(k, shape, jnp.float32, -scale, scale)

    kH = 1.0 / math.sqrt(hidden_size)
    # PyTorch LSTM params: weight_ih (4H, I), weight_hh (4H, H), biases (4H,)
    # in gate order [i, f, g, o].
    w_ih_f = u(ks[0], (4 * hidden_size, input_size), kH)
    w_hh_f = u(ks[1], (4 * hidden_size, hidden_size), kH)
    b_ih_f = u(ks[2], (4 * hidden_size,), kH)
    b_hh_f = u(ks[3], (4 * hidden_size,), kH)
    w_ih_b = u(ks[4], (4 * hidden_size, input_size), kH)
    w_hh_b = u(ks[5], (4 * hidden_size, hidden_size), kH)
    b_ih_b = u(ks[6], (4 * hidden_size,), kH)
    b_hh_b = u(ks[7], (4 * hidden_size,), kH)

    kfc = 1.0 / math.sqrt(2 * hidden_size)
    w_fc = u(ks[8], (fc_hidden, 2 * hidden_size), kfc)
    b_fc = u(ks[9], (fc_hidden,), kfc)
    kout = 1.0 / math.sqrt(fc_hidden)
    w_out = u(ks[10], (output_size, fc_hidden), kout)
    b_out = u(ks[11], (output_size,), kout)

    GATE_ORDER = (0, 1, 3, 2)   # PyTorch [i, f, g, o] -> packed [i, f, o, g]

    def pack_w(w, in_dim):       # (4H, in) -> (in, 4H) packed, x @ W convention
        wg = w.reshape(4, hidden_size, in_dim)
        return jnp.concatenate([wg[g].T for g in GATE_ORDER], axis=1)

    def pack_b(b_ih, b_hh):      # (4H,) -> (1, 4H) packed (ih + hh biases fused)
        bg = (b_ih + b_hh).reshape(4, hidden_size)
        return jnp.concatenate([bg[g] for g in GATE_ORDER])[None, :]

    w_fc_t = w_fc.T              # (2H, fc_hidden); [:H] fwd half, [H:] bwd half
    return dict(
        wih_f=pack_w(w_ih_f, input_size), whh_f=pack_w(w_hh_f, hidden_size),
        b_f=pack_b(b_ih_f, b_hh_f),
        wih_b=pack_w(w_ih_b, input_size), whh_b=pack_w(w_hh_b, hidden_size),  # whh_b: reference only
        b_b=pack_b(b_ih_b, b_hh_b),
        wfc_f=w_fc_t[:hidden_size, :], wfc_b=w_fc_t[hidden_size:, :],
        bfc=b_fc[None, :],
        wout=w_out.T, bout=b_out[None, :],
    )


def _reference_forward(x, params):
    """Pure-JAX reference mirroring the PyTorch forward (eval mode), including
    the FULL reverse-direction scan (validates the kernel's reverse shortcut)."""
    B, T, I = x.shape
    H = params["whh_f"].shape[0]

    def cell(xt, h, c, wih, whh, b):
        pre = xt @ wih + h @ whh + b            # (B, 4H), packed order [i, f, o, g]
        i = jax.nn.sigmoid(pre[:, :H])
        f = jax.nn.sigmoid(pre[:, H:2 * H])
        o = jax.nn.sigmoid(pre[:, 2 * H:3 * H])
        g = jnp.tanh(pre[:, 3 * H:])
        c = f * c + i * g
        h = o * jnp.tanh(c)
        return h, c

    h = jnp.zeros((B, H), jnp.float32)
    c = jnp.zeros((B, H), jnp.float32)
    for t in range(T):
        h, c = cell(x[:, t, :], h, c,
                    params["wih_f"], params["whh_f"], params["b_f"])
    h_fwd_last = h

    hb = jnp.zeros((B, H), jnp.float32)
    cb = jnp.zeros((B, H), jnp.float32)
    hb_at_last = None
    for t in range(T - 1, -1, -1):       # reverse scan; output pos T-1 is its first step
        hb, cb = cell(x[:, t, :], hb, cb,
                      params["wih_b"], params["whh_b"], params["b_b"])
        if t == T - 1:
            hb_at_last = hb

    hid = jnp.maximum(h_fwd_last @ params["wfc_f"]
                      + hb_at_last @ params["wfc_b"] + params["bfc"], 0.0)
    return hid @ params["wout"] + params["bout"]


if __name__ == "__main__":
    B, T, I, H = 2, 8, 16, 32   # small shapes consistent with the module
    key = jax.random.PRNGKey(0)
    k_x, k_p = jax.random.split(key)
    x = jax.random.normal(k_x, (B, T, I), jnp.float32)
    params = init_params(k_p, input_size=I, hidden_size=H)

    out = jax.block_until_ready(bilstm_forward(x, params))

    ref = _reference_forward(x, params)
    assert out.shape == (B, 1)
    assert jnp.allclose(out, ref, atol=1e-4, rtol=1e-4), (out, ref)
    print("KERNEL_OK")
</pallas_src>

<mosaic_0001>
module attributes {stable_mosaic.version = 11 : i64} {
  func.func @_bilstm_head_kernel(%arg0: memref<8x2x16xf32, #tpu.memory_space<vmem>>, %arg1: memref<16x128xf32, #tpu.memory_space<vmem>>, %arg2: memref<32x128xf32, #tpu.memory_space<vmem>>, %arg3: memref<1x128xf32, #tpu.memory_space<vmem>>, %arg4: memref<16x128xf32, #tpu.memory_space<vmem>>, %arg5: memref<1x128xf32, #tpu.memory_space<vmem>>, %arg6: memref<32x64xf32, #tpu.memory_space<vmem>>, %arg7: memref<32x64xf32, #tpu.memory_space<vmem>>, %arg8: memref<1x64xf32, #tpu.memory_space<vmem>>, %arg9: memref<64x1xf32, #tpu.memory_space<vmem>>, %arg10: memref<1x1xf32, #tpu.memory_space<vmem>>, %arg11: memref<2x1xf32, #tpu.memory_space<vmem>>) attributes {dimension_semantics = [], scalar_prefetch = 0 : i64, scratch_operands = 0 : i64, tpu.core_type = #tpu.core_type<tc>} {
    %c0 = arith.constant 0 : index
    %c0_0 = arith.constant 0 : index
    %c0_1 = arith.constant 0 : index
    %0 = vector.load %arg0[%c0, %c0_0, %c0_1] : memref<8x2x16xf32, #tpu.memory_space<vmem>>, vector<8x2x16xf32>
    %1 = vector.shape_cast %0 : vector<8x2x16xf32> to vector<16x16xf32>
    %c0_2 = arith.constant 0 : index
    %c0_3 = arith.constant 0 : index
    %2 = vector.load %arg1[%c0_2, %c0_3] : memref<16x128xf32, #tpu.memory_space<vmem>>, vector<16x128xf32>
    %cst = arith.constant dense<0.000000e+00> : vector<16x128xf32>
    %3 = tpu.matmul %1, %2, %cst {dimension_numbers = #tpu.dot_dimension_numbers<[1], [0], [0], [1], [0, 0, 1, 1], [], []>} : vector<16x16xf32>, vector<16x128xf32>, vector<16x128xf32> -> vector<16x128xf32>
    %c0_4 = arith.constant 0 : index
    %c0_5 = arith.constant 0 : index
    %4 = vector.load %arg3[%c0_4, %c0_5] : memref<1x128xf32, #tpu.memory_space<vmem>>, vector<1x128xf32>
    %5 = vector.broadcast %4 : vector<1x128xf32> to vector<16x128xf32>
    %6 = arith.addf %3, %5 : vector<16x128xf32>
    %c0_6 = arith.constant 0 : index
    %c0_7 = arith.constant 0 : index
    %7 = vector.load %arg2[%c0_6, %c0_7] : memref<32x128xf32, #tpu.memory_space<vmem>>, vector<32x128xf32>
    %cst_8 = arith.constant 0.000000e+00 : f32
    %8 = vector.broadcast %cst_8 : f32 to vector<2x32xf32>
    %cst_9 = arith.constant 0.000000e+00 : f32
    %9 = vector.broadcast %cst_9 : f32 to vector<2x32xf32>
    %10 = vector.extract_strided_slice %6 {offsets = [0, 0], sizes = [2, 128], strides = [1, 1]} : vector<16x128xf32> to vector<2x128xf32>
    %cst_10 = arith.constant dense<0.000000e+00> : vector<2x128xf32>
    %11 = tpu.matmul %8, %7, %cst_10 {dimension_numbers = #tpu.dot_dimension_numbers<[1], [0], [0], [1], [0, 0, 1, 1], [], []>} : vector<2x32xf32>, vector<32x128xf32>, vector<2x128xf32> -> vector<2x128xf32>
    %12 = arith.addf %10, %11 : vector<2x128xf32>
    %13 = vector.extract_strided_slice %12 {offsets = [0, 0], sizes = [2, 96], strides = [1, 1]} : vector<2x128xf32> to vector<2x96xf32>
    %14 = arith.negf %13 : vector<2x96xf32>
    %15 = math.exp %14 : vector<2x96xf32>
    %cst_11 = arith.constant 1.000000e+00 : f32
    %16 = vector.broadcast %cst_11 : f32 to vector<2x96xf32>
    %17 = arith.addf %16, %15 : vector<2x96xf32>
    %18 = arith.divf %16, %17 : vector<2x96xf32>
    %19 = vector.extract_strided_slice %12 {offsets = [0, 96], sizes = [2, 32], strides = [1, 1]} : vector<2x128xf32> to vector<2x32xf32>
    %20 = math.tanh %19 : vector<2x32xf32>
    %21 = vector.extract_strided_slice %18 {offsets = [0, 0], sizes = [2, 32], strides = [1, 1]} : vector<2x96xf32> to vector<2x32xf32>
    %22 = vector.extract_strided_slice %18 {offsets = [0, 32], sizes = [2, 32], strides = [1, 1]} : vector<2x96xf32> to vector<2x32xf32>
    %23 = vector.extract_strided_slice %18 {offsets = [0, 64], sizes = [2, 32], strides = [1, 1]} : vector<2x96xf32> to vector<2x32xf32>
    %24 = arith.mulf %22, %9 : vector<2x32xf32>
    %25 = arith.mulf %21, %20 : vector<2x32xf32>
    %26 = arith.addf %24, %25 : vector<2x32xf32>
    %27 = math.tanh %26 : vector<2x32xf32>
    %28 = arith.mulf %23, %27 : vector<2x32xf32>
    %29 = vector.extract_strided_slice %6 {offsets = [2, 0], sizes = [2, 128], strides = [1, 1]} : vector<16x128xf32> to vector<2x128xf32>
    %cst_12 = arith.constant dense<0.000000e+00> : vector<2x128xf32>
    %30 = tpu.matmul %28, %7, %cst_12 {dimension_numbers = #tpu.dot_dimension_numbers<[1], [0], [0], [1], [0, 0, 1, 1], [], []>} : vector<2x32xf32>, vector<32x128xf32>, vector<2x128xf32> -> vector<2x128xf32>
    %31 = arith.addf %29, %30 : vector<2x128xf32>
    %32 = vector.extract_strided_slice %31 {offsets = [0, 0], sizes = [2, 96], strides = [1, 1]} : vector<2x128xf32> to vector<2x96xf32>
    %33 = arith.negf %32 : vector<2x96xf32>
    %34 = math.exp %33 : vector<2x96xf32>
    %cst_13 = arith.constant 1.000000e+00 : f32
    %35 = vector.broadcast %cst_13 : f32 to vector<2x96xf32>
    %36 = arith.addf %35, %34 : vector<2x96xf32>
    %37 = arith.divf %35, %36 : vector<2x96xf32>
    %38 = vector.extract_strided_slice %31 {offsets = [0, 96], sizes = [2, 32], strides = [1, 1]} : vector<2x128xf32> to vector<2x32xf32>
    %39 = math.tanh %38 : vector<2x32xf32>
    %40 = vector.extract_strided_slice %37 {offsets = [0, 0], sizes = [2, 32], strides = [1, 1]} : vector<2x96xf32> to vector<2x32xf32>
    %41 = vector.extract_strided_slice %37 {offsets = [0, 32], sizes = [2, 32], strides = [1, 1]} : vector<2x96xf32> to vector<2x32xf32>
    %42 = vector.extract_strided_slice %37 {offsets = [0, 64], sizes = [2, 32], strides = [1, 1]} : vector<2x96xf32> to vector<2x32xf32>
    %43 = arith.mulf %41, %26 : vector<2x32xf32>
    %44 = arith.mulf %40, %39 : vector<2x32xf32>
    %45 = arith.addf %43, %44 : vector<2x32xf32>
    %46 = math.tanh %45 : vector<2x32xf32>
    %47 = arith.mulf %42, %46 : vector<2x32xf32>
    %48 = vector.extract_strided_slice %6 {offsets = [4, 0], sizes = [2, 128], strides = [1, 1]} : vector<16x128xf32> to vector<2x128xf32>
    %cst_14 = arith.constant dense<0.000000e+00> : vector<2x128xf32>
    %49 = tpu.matmul %47, %7, %cst_14 {dimension_numbers = #tpu.dot_dimension_numbers<[1], [0], [0], [1], [0, 0, 1, 1], [], []>} : vector<2x32xf32>, vector<32x128xf32>, vector<2x128xf32> -> vector<2x128xf32>
    %50 = arith.addf %48, %49 : vector<2x128xf32>
    %51 = vector.extract_strided_slice %50 {offsets = [0, 0], sizes = [2, 96], strides = [1, 1]} : vector<2x128xf32> to vector<2x96xf32>
    %52 = arith.negf %51 : vector<2x96xf32>
    %53 = math.exp %52 : vector<2x96xf32>
    %cst_15 = arith.constant 1.000000e+00 : f32
    %54 = vector.broadcast %cst_15 : f32 to vector<2x96xf32>
    %55 = arith.addf %54, %53 : vector<2x96xf32>
    %56 = arith.divf %54, %55 : vector<2x96xf32>
    %57 = vector.extract_strided_slice %50 {offsets = [0, 96], sizes = [2, 32], strides = [1, 1]} : vector<2x128xf32> to vector<2x32xf32>
    %58 = math.tanh %57 : vector<2x32xf32>
    %59 = vector.extract_strided_slice %56 {offsets = [0, 0], sizes = [2, 32], strides = [1, 1]} : vector<2x96xf32> to vector<2x32xf32>
    %60 = vector.extract_strided_slice %56 {offsets = [0, 32], sizes = [2, 32], strides = [1, 1]} : vector<2x96xf32> to vector<2x32xf32>
    %61 = vector.extract_strided_slice %56 {offsets = [0, 64], sizes = [2, 32], strides = [1, 1]} : vector<2x96xf32> to vector<2x32xf32>
    %62 = arith.mulf %60, %45 : vector<2x32xf32>
    %63 = arith.mulf %59, %58 : vector<2x32xf32>
    %64 = arith.addf %62, %63 : vector<2x32xf32>
    %65 = math.tanh %64 : vector<2x32xf32>
    %66 = arith.mulf %61, %65 : vector<2x32xf32>
    %67 = vector.extract_strided_slice %6 {offsets = [6, 0], sizes = [2, 128], strides = [1, 1]} : vector<16x128xf32> to vector<2x128xf32>
    %cst_16 = arith.constant dense<0.000000e+00> : vector<2x128xf32>
    %68 = tpu.matmul %66, %7, %cst_16 {dimension_numbers = #tpu.dot_dimension_numbers<[1], [0], [0], [1], [0, 0, 1, 1], [], []>} : vector<2x32xf32>, vector<32x128xf32>, vector<2x128xf32> -> vector<2x128xf32>
    %69 = arith.addf %67, %68 : vector<2x128xf32>
    %70 = vector.extract_strided_slice %69 {offsets = [0, 0], sizes = [2, 96], strides = [1, 1]} : vector<2x128xf32> to vector<2x96xf32>
    %71 = arith.negf %70 : vector<2x96xf32>
    %72 = math.exp %71 : vector<2x96xf32>
    %cst_17 = arith.constant 1.000000e+00 : f32
    %73 = vector.broadcast %cst_17 : f32 to vector<2x96xf32>
    %74 = arith.addf %73, %72 : vector<2x96xf32>
    %75 = arith.divf %73, %74 : vector<2x96xf32>
    %76 = vector.extract_strided_slice %69 {offsets = [0, 96], sizes = [2, 32], strides = [1, 1]} : vector<2x128xf32> to vector<2x32xf32>
    %77 = math.tanh %76 : vector<2x32xf32>
    %78 = vector.extract_strided_slice %75 {offsets = [0, 0], sizes = [2, 32], strides = [1, 1]} : vector<2x96xf32> to vector<2x32xf32>
    %79 = vector.extract_strided_slice %75 {offsets = [0, 32], sizes = [2, 32], strides = [1, 1]} : vector<2x96xf32> to vector<2x32xf32>
    %80 = vector.extract_strided_slice %75 {offsets = [0, 64], sizes = [2, 32], strides = [1, 1]} : vector<2x96xf32> to vector<2x32xf32>
    %81 = arith.mulf %79, %64 : vector<2x32xf32>
    %82 = arith.mulf %78, %77 : vector<2x32xf32>
    %83 = arith.addf %81, %82 : vector<2x32xf32>
    %84 = math.tanh %83 : vector<2x32xf32>
    %85 = arith.mulf %80, %84 : vector<2x32xf32>
    %86 = vector.extract_strided_slice %6 {offsets = [8, 0], sizes = [2, 128], strides = [1, 1]} : vector<16x128xf32> to vector<2x128xf32>
    %cst_18 = arith.constant dense<0.000000e+00> : vector<2x128xf32>
    %87 = tpu.matmul %85, %7, %cst_18 {dimension_numbers = #tpu.dot_dimension_numbers<[1], [0], [0], [1], [0, 0, 1, 1], [], []>} : vector<2x32xf32>, vector<32x128xf32>, vector<2x128xf32> -> vector<2x128xf32>
    %88 = arith.addf %86, %87 : vector<2x128xf32>
    %89 = vector.extract_strided_slice %88 {offsets = [0, 0], sizes = [2, 96], strides = [1, 1]} : vector<2x128xf32> to vector<2x96xf32>
    %90 = arith.negf %89 : vector<2x96xf32>
    %91 = math.exp %90 : vector<2x96xf32>
    %cst_19 = arith.constant 1.000000e+00 : f32
    %92 = vector.broadcast %cst_19 : f32 to vector<2x96xf32>
    %93 = arith.addf %92, %91 : vector<2x96xf32>
    %94 = arith.divf %92, %93 : vector<2x96xf32>
    %95 = vector.extract_strided_slice %88 {offsets = [0, 96], sizes = [2, 32], strides = [1, 1]} : vector<2x128xf32> to vector<2x32xf32>
    %96 = math.tanh %95 : vector<2x32xf32>
    %97 = vector.extract_strided_slice %94 {offsets = [0, 0], sizes = [2, 32], strides = [1, 1]} : vector<2x96xf32> to vector<2x32xf32>
    %98 = vector.extract_strided_slice %94 {offsets = [0, 32], sizes = [2, 32], strides = [1, 1]} : vector<2x96xf32> to vector<2x32xf32>
    %99 = vector.extract_strided_slice %94 {offsets = [0, 64], sizes = [2, 32], strides = [1, 1]} : vector<2x96xf32> to vector<2x32xf32>
    %100 = arith.mulf %98, %83 : vector<2x32xf32>
    %101 = arith.mulf %97, %96 : vector<2x32xf32>
    %102 = arith.addf %100, %101 : vector<2x32xf32>
    %103 = math.tanh %102 : vector<2x32xf32>
    %104 = arith.mulf %99, %103 : vector<2x32xf32>
    %105 = vector.extract_strided_slice %6 {offsets = [10, 0], sizes = [2, 128], strides = [1, 1]} : vector<16x128xf32> to vector<2x128xf32>
    %cst_20 = arith.constant dense<0.000000e+00> : vector<2x128xf32>
    %106 = tpu.matmul %104, %7, %cst_20 {dimension_numbers = #tpu.dot_dimension_numbers<[1], [0], [0], [1], [0, 0, 1, 1], [], []>} : vector<2x32xf32>, vector<32x128xf32>, vector<2x128xf32> -> vector<2x128xf32>
    %107 = arith.addf %105, %106 : vector<2x128xf32>
    %108 = vector.extract_strided_slice %107 {offsets = [0, 0], sizes = [2, 96], strides = [1, 1]} : vector<2x128xf32> to vector<2x96xf32>
    %109 = arith.negf %108 : vector<2x96xf32>
    %110 = math.exp %109 : vector<2x96xf32>
    %cst_21 = arith.constant 1.000000e+00 : f32
    %111 = vector.broadcast %cst_21 : f32 to vector<2x96xf32>
    %112 = arith.addf %111, %110 : vector<2x96xf32>
    %113 = arith.divf %111, %112 : vector<2x96xf32>
    %114 = vector.extract_strided_slice %107 {offsets = [0, 96], sizes = [2, 32], strides = [1, 1]} : vector<2x128xf32> to vector<2x32xf32>
    %115 = math.tanh %114 : vector<2x32xf32>
    %116 = vector.extract_strided_slice %113 {offsets = [0, 0], sizes = [2, 32], strides = [1, 1]} : vector<2x96xf32> to vector<2x32xf32>
    %117 = vector.extract_strided_slice %113 {offsets = [0, 32], sizes = [2, 32], strides = [1, 1]} : vector<2x96xf32> to vector<2x32xf32>
    %118 = vector.extract_strided_slice %113 {offsets = [0, 64], sizes = [2, 32], strides = [1, 1]} : vector<2x96xf32> to vector<2x32xf32>
    %119 = arith.mulf %117, %102 : vector<2x32xf32>
    %120 = arith.mulf %116, %115 : vector<2x32xf32>
    %121 = arith.addf %119, %120 : vector<2x32xf32>
    %122 = math.tanh %121 : vector<2x32xf32>
    %123 = arith.mulf %118, %122 : vector<2x32xf32>
    %124 = vector.extract_strided_slice %6 {offsets = [12, 0], sizes = [2, 128], strides = [1, 1]} : vector<16x128xf32> to vector<2x128xf32>
    %cst_22 = arith.constant dense<0.000000e+00> : vector<2x128xf32>
    %125 = tpu.matmul %123, %7, %cst_22 {dimension_numbers = #tpu.dot_dimension_numbers<[1], [0], [0], [1], [0, 0, 1, 1], [], []>} : vector<2x32xf32>, vector<32x128xf32>, vector<2x128xf32> -> vector<2x128xf32>
    %126 = arith.addf %124, %125 : vector<2x128xf32>
    %127 = vector.extract_strided_slice %126 {offsets = [0, 0], sizes = [2, 96], strides = [1, 1]} : vector<2x128xf32> to vector<2x96xf32>
    %128 = arith.negf %127 : vector<2x96xf32>
    %129 = math.exp %128 : vector<2x96xf32>
    %cst_23 = arith.constant 1.000000e+00 : f32
    %130 = vector.broadcast %cst_23 : f32 to vector<2x96xf32>
    %131 = arith.addf %130, %129 : vector<2x96xf32>
    %132 = arith.divf %130, %131 : vector<2x96xf32>
    %133 = vector.extract_strided_slice %126 {offsets = [0, 96], sizes = [2, 32], strides = [1, 1]} : vector<2x128xf32> to vector<2x32xf32>
    %134 = math.tanh %133 : vector<2x32xf32>
    %135 = vector.extract_strided_slice %132 {offsets = [0, 0], sizes = [2, 32], strides = [1, 1]} : vector<2x96xf32> to vector<2x32xf32>
    %136 = vector.extract_strided_slice %132 {offsets = [0, 32], sizes = [2, 32], strides = [1, 1]} : vector<2x96xf32> to vector<2x32xf32>
    %137 = vector.extract_strided_slice %132 {offsets = [0, 64], sizes = [2, 32], strides = [1, 1]} : vector<2x96xf32> to vector<2x32xf32>
    %138 = arith.mulf %136, %121 : vector<2x32xf32>
    %139 = arith.mulf %135, %134 : vector<2x32xf32>
    %140 = arith.addf %138, %139 : vector<2x32xf32>
    %141 = math.tanh %140 : vector<2x32xf32>
    %142 = arith.mulf %137, %141 : vector<2x32xf32>
    %143 = vector.extract_strided_slice %6 {offsets = [14, 0], sizes = [2, 128], strides = [1, 1]} : vector<16x128xf32> to vector<2x128xf32>
    %cst_24 = arith.constant dense<0.000000e+00> : vector<2x128xf32>
    %144 = tpu.matmul %142, %7, %cst_24 {dimension_numbers = #tpu.dot_dimension_numbers<[1], [0], [0], [1], [0, 0, 1, 1], [], []>} : vector<2x32xf32>, vector<32x128xf32>, vector<2x128xf32> -> vector<2x128xf32>
    %145 = arith.addf %143, %144 : vector<2x128xf32>
    %146 = vector.extract_strided_slice %145 {offsets = [0, 0], sizes = [2, 96], strides = [1, 1]} : vector<2x128xf32> to vector<2x96xf32>
    %147 = arith.negf %146 : vector<2x96xf32>
    %148 = math.exp %147 : vector<2x96xf32>
    %cst_25 = arith.constant 1.000000e+00 : f32
    %149 = vector.broadcast %cst_25 : f32 to vector<2x96xf32>
    %150 = arith.addf %149, %148 : vector<2x96xf32>
    %151 = arith.divf %149, %150 : vector<2x96xf32>
    %152 = vector.extract_strided_slice %145 {offsets = [0, 96], sizes = [2, 32], strides = [1, 1]} : vector<2x128xf32> to vector<2x32xf32>
    %153 = math.tanh %152 : vector<2x32xf32>
    %154 = vector.extract_strided_slice %151 {offsets = [0, 0], sizes = [2, 32], strides = [1, 1]} : vector<2x96xf32> to vector<2x32xf32>
    %155 = vector.extract_strided_slice %151 {offsets = [0, 32], sizes = [2, 32], strides = [1, 1]} : vector<2x96xf32> to vector<2x32xf32>
    %156 = vector.extract_strided_slice %151 {offsets = [0, 64], sizes = [2, 32], strides = [1, 1]} : vector<2x96xf32> to vector<2x32xf32>
    %157 = arith.mulf %155, %140 : vector<2x32xf32>
    %158 = arith.mulf %154, %153 : vector<2x32xf32>
    %159 = arith.addf %157, %158 : vector<2x32xf32>
    %160 = math.tanh %159 : vector<2x32xf32>
    %161 = arith.mulf %156, %160 : vector<2x32xf32>
    %162 = vector.extract_strided_slice %0 {offsets = [7, 0, 0], sizes = [1, 2, 16], strides = [1, 1, 1]} : vector<8x2x16xf32> to vector<1x2x16xf32>
    %163 = vector.shape_cast %162 : vector<1x2x16xf32> to vector<2x16xf32>
    %c0_26 = arith.constant 0 : index
    %c0_27 = arith.constant 0 : index
    %164 = vector.load %arg4[%c0_26, %c0_27] : memref<16x128xf32, #tpu.memory_space<vmem>>, vector<16x128xf32>
    %cst_28 = arith.constant dense<0.000000e+00> : vector<2x128xf32>
    %165 = tpu.matmul %163, %164, %cst_28 {dimension_numbers = #tpu.dot_dimension_numbers<[1], [0], [0], [1], [0, 0, 1, 1], [], []>} : vector<2x16xf32>, vector<16x128xf32>, vector<2x128xf32> -> vector<2x128xf32>
    %c0_29 = arith.constant 0 : index
    %c0_30 = arith.constant 0 : index
    %166 = vector.load %arg5[%c0_29, %c0_30] : memref<1x128xf32, #tpu.memory_space<vmem>>, vector<1x128xf32>
    %167 = vector.broadcast %166 : vector<1x128xf32> to vector<2x128xf32>
    %168 = arith.addf %165, %167 : vector<2x128xf32>
    %169 = vector.extract_strided_slice %168 {offsets = [0, 0], sizes = [2, 96], strides = [1, 1]} : vector<2x128xf32> to vector<2x96xf32>
    %170 = arith.negf %169 : vector<2x96xf32>
    %171 = math.exp %170 : vector<2x96xf32>
    %cst_31 = arith.constant 1.000000e+00 : f32
    %172 = vector.broadcast %cst_31 : f32 to vector<2x96xf32>
    %173 = arith.addf %172, %171 : vector<2x96xf32>
    %174 = arith.divf %172, %173 : vector<2x96xf32>
    %175 = vector.extract_strided_slice %168 {offsets = [0, 96], sizes = [2, 32], strides = [1, 1]} : vector<2x128xf32> to vector<2x32xf32>
    %176 = math.tanh %175 : vector<2x32xf32>
    %177 = vector.extract_strided_slice %174 {offsets = [0, 0], sizes = [2, 32], strides = [1, 1]} : vector<2x96xf32> to vector<2x32xf32>
    %178 = arith.mulf %177, %176 : vector<2x32xf32>
    %179 = vector.extract_strided_slice %174 {offsets = [0, 64], sizes = [2, 32], strides = [1, 1]} : vector<2x96xf32> to vector<2x32xf32>
    %180 = math.tanh %178 : vector<2x32xf32>
    %181 = arith.mulf %179, %180 : vector<2x32xf32>
    %c0_32 = arith.constant 0 : index
    %c0_33 = arith.constant 0 : index
    %182 = vector.load %arg6[%c0_32, %c0_33] : memref<32x64xf32, #tpu.memory_space<vmem>>, vector<32x64xf32>
    %cst_34 = arith.constant dense<0.000000e+00> : vector<2x64xf32>
    %183 = tpu.matmul %161, %182, %cst_34 {dimension_numbers = #tpu.dot_dimension_numbers<[1], [0], [0], [1], [0, 0, 1, 1], [], []>} : vector<2x32xf32>, vector<32x64xf32>, vector<2x64xf32> -> vector<2x64xf32>
    %c0_35 = arith.constant 0 : index
    %c0_36 = arith.constant 0 : index
    %184 = vector.load %arg7[%c0_35, %c0_36] : memref<32x64xf32, #tpu.memory_space<vmem>>, vector<32x64xf32>
    %cst_37 = arith.constant dense<0.000000e+00> : vector<2x64xf32>
    %185 = tpu.matmul %181, %184, %cst_37 {dimension_numbers = #tpu.dot_dimension_numbers<[1], [0], [0], [1], [0, 0, 1, 1], [], []>} : vector<2x32xf32>, vector<32x64xf32>, vector<2x64xf32> -> vector<2x64xf32>
    %186 = arith.addf %183, %185 : vector<2x64xf32>
    %c0_38 = arith.constant 0 : index
    %c0_39 = arith.constant 0 : index
    %187 = vector.load %arg8[%c0_38, %c0_39] : memref<1x64xf32, #tpu.memory_space<vmem>>, vector<1x64xf32>
    %188 = vector.broadcast %187 : vector<1x64xf32> to vector<2x64xf32>
    %189 = arith.addf %186, %188 : vector<2x64xf32>
    %cst_40 = arith.constant 0.000000e+00 : f32
    %190 = vector.broadcast %cst_40 : f32 to vector<2x64xf32>
    %191 = arith.maximumf %189, %190 : vector<2x64xf32>
    %c0_41 = arith.constant 0 : index
    %c0_42 = arith.constant 0 : index
    %192 = vector.load %arg9[%c0_41, %c0_42] : memref<64x1xf32, #tpu.memory_space<vmem>>, vector<64x1xf32>
    %cst_43 = arith.constant dense<0.000000e+00> : vector<2x1xf32>
    %193 = tpu.matmul %191, %192, %cst_43 {dimension_numbers = #tpu.dot_dimension_numbers<[1], [0], [0], [1], [0, 0, 1, 1], [], []>} : vector<2x64xf32>, vector<64x1xf32>, vector<2x1xf32> -> vector<2x1xf32>
    %c0_44 = arith.constant 0 : index
    %c0_45 = arith.constant 0 : index
    %194 = vector.load %arg10[%c0_44, %c0_45] : memref<1x1xf32, #tpu.memory_space<vmem>>, vector<1x1xf32>
    %195 = vector.broadcast %194 : vector<1x1xf32> to vector<2x1xf32>
    %196 = arith.addf %193, %195 : vector<2x1xf32>
    %c0_46 = arith.constant 0 : index
    %c0_47 = arith.constant 0 : index
    %197 = vector.load %arg11[%c0_46, %c0_47] : memref<2x1xf32, #tpu.memory_space<vmem>>, vector<2x1xf32>
    tpu.vector_store %arg11[%c0_46, %c0_47], %196 {strides = array<i32>} : memref<2x1xf32, #tpu.memory_space<vmem>>, vector<2x1xf32>,
    return
  }
}

</mosaic_0001>

<bundles_post_ra>
// kernel: tpu_custom_call.1
= control target key start
LH: loop header
LB: loop body
LE: loop exit
PB: predicated region body
PF: predicated region fallthrough
CT: control target
= control target key end

     0   :  { %s2272_s0 = inlined_call_operand.hbm [shape: f32[8,2,16], index: 0, kind: input, shape index: {}]   ;;  %s2273_s1 = inlined_call_operand.hbm [shape: f32[16,128], index: 1, kind: input, shape index: {}]   ;;  %s2274_s2 = inlined_call_operand.vmem [shape: f32[32,128], index: 2, kind: input, shape index: {}]   ;;  %s2275_s3 = inlined_call_operand.hbm [shape: f32[1,128], index: 3, kind: input, shape index: {}]   ;;  %s2276_s4 = inlined_call_operand.vmem [shape: f32[16,128], index: 4, kind: input, shape index: {}]   ;;  %s2277_s5 = inlined_call_operand.vmem [shape: f32[1,128], index: 5, kind: input, shape index: {}]   ;;  %s2278_s6 = inlined_call_operand.vmem [shape: f32[32,64], index: 6, kind: input, shape index: {}]   ;;  %s2279_s7 = inlined_call_operand.hbm [shape: f32[32,64], index: 7, kind: input, shape index: {}]   ;;  %s2280_s8 = inlined_call_operand.vmem [shape: f32[1,64], index: 8, kind: input, shape index: {}]   ;;  %s2281_s9 = inlined_call_operand.vmem [shape: f32[64,1], index: 9, kind: input, shape index: {}]   ;;  %s2282_s10 = inlined_call_operand.<no memory space> [shape: f32[1,1], index: 10, kind: input, shape index: {}]   ;;  %s2283_s11 = inlined_call_operand.vmem [shape: f32[2,1], index: 11, kind: output, shape index: {}]  }
   0x1   :  { %v16_v0 = vstv %s2282_s10 }
   0x2   :  { %17 = vst [vmem:[#allocation2] sm:$0x1] %v16_v0 }
   0x3   :  { %18 = vsyncpa [#allocation4], 0 }
   0x4   :  { %19 = vsyncpa [#allocation6], 0 }
   0x5   :  { %20 = vsyncpa [#allocation9], 0  ;;  %s1937_s19 = smov [#allocation5]   ;;  %s1843_s23 = scalar_lea.hbm %s2273_s1, 256 }
   0x6   :  { %s38_s20 = sshll.u32 %s1937_s19, 4  ;;  %p1844_p0 = scmp.ne.s32.totalorder %s2273_s1, %s1843_s23  ;;  %s39_s20 = int_to_ptr.vmem [resolvable:$true] %s38_s20 }
   0x7   :  { %p1847_p1 = scmp.lt.u32.totalorder %s1843_s23, %s2273_s1 }
   0x9   :  { %p1849_p2 = pnand %p1847_p1, %p1844_p0 }
   0xb   :  { %1852 = shalt.err (!%p1849_p2)
}
   0xc   :  { %s1853_s10 = scalar_lea.vmem %s39_s20, 256  ;;  %p1858_p4 = scmp.lt.s32.totalorder %s39_s20, %s39_s20 }
   0xd   :  { %p1854_p3 = scmp.ne.s32.totalorder %s39_s20, %s1853_s10  ;;  %p1859_p5 = scmp.lt.s32.totalorder %s1853_s10, %s1853_s10 }
   0xf   :  { %p1860_p6 = por %p1859_p5, %p1858_p4 }
  0x11   :  { %p1861_p7 = pnand %p1860_p6, %p1854_p3 }
  0x13   :  { %1864 = shalt.err (!%p1861_p7)
}
  0x14   :  { %s1938_s28 = smov 128   ;;  %s1939_s29 = smov 8  }
  0x15   :  { %44 = dma.hbm_to_vmem [thread:$0]  %s2273_s1, 256, %s39_s20, [#allocation6], %s1938_s28, %s1938_s28, %s1939_s29  }
  0x16   :  { %s1940_s13 = smov [#allocation3]   ;;  %s1865_s17 = scalar_lea.hbm %s2272_s0, 256 }
  0x17   :  { %s26_s14 = sshll.u32 %s1940_s13, 4  ;;  %p1866_p8 = scmp.ne.s32.totalorder %s2272_s0, %s1865_s17  ;;  %s27_s14 = int_to_ptr.vmem [resolvable:$true] %s26_s14 }
  0x18   :  { %p1869_p9 = scmp.lt.u32.totalorder %s1865_s17, %s2272_s0 }
  0x1a   :  { %p1871_p10 = pnand %p1869_p9, %p1866_p8 }
  0x1c   :  { %1874 = shalt.err (!%p1871_p10)
}
  0x1d   :  { %s1875_s23 = scalar_lea.vmem %s27_s14, 256  ;;  %p1880_p12 = scmp.lt.s32.totalorder %s27_s14, %s27_s14 }
  0x1e   :  { %p1876_p11 = scmp.ne.s32.totalorder %s27_s14, %s1875_s23  ;;  %p1881_p13 = scmp.lt.s32.totalorder %s1875_s23, %s1875_s23 }
  0x20   :  { %p1882_p0 = por %p1881_p13, %p1880_p12 }
  0x22   :  { %p1883_p1 = pnand %p1882_p0, %p1876_p11 }
  0x24   :  { %1886 = shalt.err (!%p1883_p1)
}
  0x25   :  { %s1941_s1 = smov 32   ;;  %s1942_s20 = smov 2  }
  0x26   :  { %32 = dma.hbm_to_vmem [thread:$0]  %s2272_s0, 256, %s27_s14, [#allocation4], %s1941_s1, %s1941_s1, %s1942_s20  }
  0x27   :  { %s1943_s26 = smov [#allocation7]   ;;  %s1944_s10 = smov [#allocation8]  }
  0x28   :  { %s53_s27 = sshll.u32 %s1943_s26, 4  ;;  %s68_s30 = sshll.u32 %s1944_s10, 4  ;;  %s54_s27 = int_to_ptr.vmem [resolvable:$true] %s53_s27  ;;  %s2042_s30 = int_to_ptr.vmem [resolvable:$true] %s68_s30 }
  0x29   :  { %s1887_s15 = scalar_lea.hbm %s2275_s3, 16 }
  0x2a   :  { %p1888_p2 = scmp.ne.s32.totalorder %s2275_s3, %s1887_s15  ;;  %p1891_p3 = scmp.lt.u32.totalorder %s1887_s15, %s2275_s3 }
  0x2c   :  { %p1893_p4 = pnand %p1891_p3, %p1888_p2 }
  0x2e   :  { %1896 = shalt.err (!%p1893_p4)
}
  0x2f   :  { %s1897_s0 = scalar_lea.vmem %s54_s27, 16  ;;  %s1901_s14 = scalar_lea.vmem %s54_s27, 32 }
  0x30   :  { %p1898_p5 = scmp.ne.s32.totalorder %s54_s27, %s1897_s0  ;;  %p1902_p6 = scmp.lt.s32.totalorder %s54_s27, %s54_s27 }
  0x31   :  { %p1903_p7 = scmp.lt.s32.totalorder %s1901_s14, %s1897_s0 }
  0x33   :  { %p1904_p8 = por %p1903_p7, %p1902_p6 }
  0x35   :  { %p1905_p9 = pnand %p1904_p8, %p1898_p5 }
  0x37   :  { %1908 = shalt.err (!%p1905_p9)
}
  0x38   :  { %56 = dma.hbm_to_vmem [thread:$0]  %s2275_s3, 16, %s54_s27, [#allocation6]  }
  0x39   :  { %s1909_s24 = scalar_lea.hbm %s2279_s7, 512 }
  0x3a   :  { %p1910_p10 = scmp.ne.s32.totalorder %s2279_s7, %s1909_s24  ;;  %p1913_p11 = scmp.lt.u32.totalorder %s1909_s24, %s2279_s7 }
  0x3c   :  { %p1915_p12 = pnand %p1913_p11, %p1910_p10 }
  0x3e   :  { %1918 = shalt.err (!%p1915_p12)
}
  0x3f   :  { %s1919_s13 = scalar_lea.vmem %s2042_s30, 512  ;;  %p1924_p0 = scmp.lt.s32.totalorder %s2042_s30, %s2042_s30 }
  0x40   :  { %p1920_p13 = scmp.ne.s32.totalorder %s2042_s30, %s1919_s13  ;;  %p1925_p1 = scmp.lt.s32.totalorder %s1919_s13, %s1919_s13 }
  0x42   :  { %p1926_p2 = por %p1925_p1, %p1924_p0 }
  0x44   :  { %p1927_p3 = pnand %p1926_p2, %p1920_p13 }
  0x46   :  { %1930 = shalt.err (!%p1927_p3)
}
  0x47   :  { %74 = dma.hbm_to_vmem [thread:$0]  %s2279_s7, 512, %s2042_s30, [#allocation9], %s1938_s28, %s1938_s28, %s1939_s29  }
  0x48   :  { %1931 = dma.done.wait [#allocation4], 256  }
  0x49   :  { %1932 = vsyncadd [#allocation4], 4294967040 }
  0x4a   :  { %1933 = dma.done.wait [#allocation6], 272  }
  0x4b   :  { %1934 = vsyncadd [#allocation6], 4294967024 }
  0x4c   :  { %1935 = dma.done.wait [#allocation9], 512  }
  0x4d   :  { %1936 = vsyncadd [#allocation9], 4294966784  ;;  %v123_v1 = vlaneseq  ;;  %v1945_v2 = vmov 0.0|0.0   ;;  %v1946_v3 = vmov 1983009808   ;;  %vm1947_vm0 = vmmov 0  }
  0x4e   :  { %1683 = vmatprep.subr.bf16.mxu1 %v1945_v2  ;;  %v121_v4 = vunpack.c.l.s4 %v1946_v3  ;;  %v1948_v5 = vmov 0.0   ;;  %v232_v8 = vld [vmem:[%s2274_s2] sm:$0xff]  ;;  %v233_v9 = vld [vmem:[%s2274_s2 + $0x8] sm:$0xff]  ;;  %v101_v10 = vld [vmem:[#allocation5] sm:$0xff]  ;;  %vm152_vm1 = vcmask 130048   ;;  %vm236_vm2 = vcmask 261120  }
  0x4f   :  { %1551 = vmatprep.mubr.msk.f32.mxu1 %vm1947_vm0, %v1948_v5  ;;  %v124_v7 = vshrl.u32 %v123_v1, 7  ;;  %v2085_v12 = vpack.c.bf16 %v233_v9, %v232_v8  ;;  %v102_v13 = vld [vmem:[#allocation5 + $0x8] sm:$0xff]  ;;  %v93_v14 = vld [vmem:[#allocation3] sm:$0x3]  ;;  %v94_v15 = vld [vmem:[#allocation3 + $0x2] sm:$0x3] }
  0x50   :  { %v122_v6 = vunpack.c.0.s8 %v121_v4  ;;  %v1679_v16 = vpack.c.bf16 %v102_v13, %v101_v10  ;;  %v95_v17 = vld [vmem:[#allocation3 + $0x4] sm:$0x3]  ;;  %v96_v18 = vld [vmem:[#allocation3 + $0x6] sm:$0x3]  ;;  %v118_v19 = vcombine.low %v93_v14, %v94_v15  ;;  %v234_v20 = vld [vmem:[%s2274_s2 + $0x10] sm:$0xff]  ;;  %vm1361_vm3 = vcmask 523264  }
  0x51   :  { %1685 = vmatpush3.bf16.msra.mxu1 %v2085_v12  ;;  %v119_v21 = vcombine.low %v95_v17, %v96_v18  ;;  %v235_v22 = vld [vmem:[%s2274_s2 + $0x18] sm:$0xff]  ;;  %v97_v23 = vld [vmem:[#allocation3 + $0x8] sm:$0x3]  ;;  %v98_v24 = vld [vmem:[#allocation3 + $0xa] sm:$0x3]  ;;  %s1949_s2 = smov 64  }
  0x52   :  { %v125_v11 = vsub.s32 %v122_v6, %v124_v7  ;;  %1680 = vmatprep.subr.bf16.mxu0 %v1679_v16  ;;  %1686 = vmatprep.subr.bf16.mxu1 %v1945_v2  ;;  %v2095_v26 = vpack.c.bf16 %v235_v22, %v234_v20  ;;  %v99_v27 = vld [vmem:[#allocation3 + $0xc] sm:$0x3]  ;;  %v2097_v28 = vld [vmem:[#allocation3 + $0xe] sm:$0x3]  ;;  %v135_v29 = vcombine.low %v97_v23, %v98_v24  ;;  %v1444_v36 = vld [vmem:[#allocation7] ss:$0 sm:$0xff] }
  0x53   :  { %1682 = vmatpush3.bf16.msra.mxu0 %v1679_v16  ;;  %v136_v31 = vcombine.low %v99_v27, %v2097_v28  ;;  %vm1435_vm4 = vcmask 1024  }
  0x54   :  { %v126_v25 = vrot.slane %v118_v19, %v125_v11  ;;  %v133_v30 = vrot.slane %v119_v21, %v125_v11  ;;  %v143_v32 = vrot.slane %v135_v29, %v125_v11  ;;  %1701 = vmatprep.subr.bf16.mxu0 %v1945_v2 }
  0x55   :  { %1688 = vmatpush3.bf16.msra.mxu1 %v2095_v26  ;;  %v150_v34 = vrot.slane %v136_v31, %v125_v11 }
  0x56   :  { %v134_v33 = vcombine.low %v126_v25, %v133_v30  ;;  %1689 = vmatprep.subr.bf16.mxu1 %v1945_v2 }
  0x57   :  { %v151_v35 = vcombine.low %v143_v32, %v150_v34 }
  0x58   :  { %1540 = vmatprep.mubr.msk.f32.mxu0 %vm152_vm1, %v134_v33  ;;  %1552 = vmatmul.mubr.f32.vlgmr.msra.gmra.mrb[0].mxu1 %v1948_v5 }
  0x59   :  { %1541 = vmatmul.mubr.msk.f32.vlgmr.msra.gmra.mrb[0].mxu0 %vm152_vm1, %v151_v35  ;;  %1691 = vmatpush3.bf16.msra.mxu1 %v2085_v12 }
  0x5a   :  { %1692 = vmatprep.subr.bf16.mxu1 %v1945_v2  ;;  %1562 = vmatprep.mubr.msk.f32.mxu1 %vm1947_vm0, %v1948_v5 }
  0x5b   :  { %1703 = vmatpush3.bf16.msra.mxu0 %v2085_v12  ;;  %1584 = vmatprep.mubr.msk.f32.mxu0 %vm1947_vm0, %v1948_v5 }
  0x5c   :  { %1704 = vmatprep.subr.bf16.mxu0 %v1945_v2 }
  0x5d   :  { %1694 = vmatpush3.bf16.msra.mxu1 %v2095_v26 }
  0x5e   :  { %1695 = vmatprep.subr.bf16.mxu1 %v1945_v2 }
  0x5f   :  { %1706 = vmatpush3.bf16.msra.mxu0 %v2095_v26 }
  0x60   :  { %1713 = vmatprep.subr.bf16.mxu0 %v1945_v2 }
 0x12b   :  { %v306_v37 = vpop.f32.mrb[0].mxu1 }
 0x12c   :  { %v1542_v38 = vpop.f32.mrb[0].mxu0  ;;  %v1553_v39 = vpop.f32.mrb[1].mxu1 }
 0x12d   :  { %v2118_v40 = vadd.f32 %v1542_v38, %v1444_v36  ;;  %v223_v41 = vpop.f32.mrb[1].mxu0 }
 0x12e   :  { %v2120_v42 = vadd.f32 %v1444_v36, %v223_v41 }
 0x130   :  { %v310_v43 = vadd.f32 %v306_v37, %v2120_v42 }
 0x132   :  { %1771 = vtanh.f32 %v310_v43  ;;  %v1447_v45 = vmul.f32 -1.442695, %v310_v43 }
 0x134   :  { %1773 = vpow2.f32 %v1447_v45 }
 0x13c   :  { %v1772_v44 = vpop.eup %1771 }
 0x13d   :  { %320 = vrot.lane.b32.xlu0 %v1772_v44, %s1941_s1 }
 0x13e   :  { %v1774_v46 = vpop.eup %1773 }
 0x13f   :  { %v314_v47 = vadd.f32 1.0, %v1774_v46 }
 0x141   :  { %1775 = vrcp.f32 %v314_v47 }
 0x14b   :  { %v1776_v48 = vpop.eup %1775 }
 0x14c   :  { %v318_v51 = vmul.f32 0.0, %v1776_v48 }
 0x1af   :  { %v321_v49 = vpop.permute.xlu0 %320 }
 0x1b0   :  { %v323_v50 = vmul.f32 %v1776_v48, %v321_v49 }
 0x1b2   :  { %325 = vrot.lane.b32.xlu0 %v323_v50, %s1941_s1 }
 0x224   :  { %v326_v52 = vpop.permute.xlu0 %325 }
 0x225   :  { %v328_v53 = vadd.f32 %v326_v52, %v318_v51 }
 0x227   :  { %1777 = vtanh.f32 %v328_v53  ;;  %v422_v7 = vrot.slane %v328_v53, 6 }
 0x231   :  { %v1778_v54 = vpop.eup %1777 }
 0x232   :  { %331 = vrot.lane.b32.xlu1 %v1778_v54, %s1941_s1 }
 0x2a4   :  { %v332_v55 = vpop.permute.xlu1 %331 }
 0x2a5   :  { %v334_v56 = vmul.f32 %v1776_v48, %v332_v55 }
 0x2a7   :  { %336 = vrot.lane.b32.xlu1 %v334_v56, %s1949_s2 }
 0x319   :  { %v337_v57 = vpop.permute.xlu1 %336 }
 0x31a   :  { %1563 = vmatmul.mubr.msk.f32.vlgmr.msra.gmra.mrb[2].mxu1 %vm236_vm2, %v337_v57 }
 0x31b   :  { %1697 = vmatpush3.bf16.msra.mxu1 %v2085_v12  ;;  %1573 = vmatprep.mubr.msk.f32.mxu1 %vm1947_vm0, %v1948_v5 }
 0x31c   :  { %1698 = vmatprep.subr.bf16.mxu1 %v1945_v2 }
 0x31f   :  { %1700 = vmatpush3.bf16.msra.mxu1 %v2095_v26 }
 0x320   :  { %1707 = vmatprep.subr.bf16.mxu1 %v1945_v2 }
 0x3ed   :  { %v406_v58 = vpop.f32.mrb[2].mxu1 }
 0x3ee   :  { %v411_v59 = vrot.slane %v406_v58, 6  ;;  %v1564_v60 = vpop.f32.mrb[3].mxu1 }
 0x3f0   :  { %v413_v61 = vadd.f32 %v411_v59, %v2120_v42 }
 0x3f2   :  { %1779 = vtanh.f32 %v413_v61  ;;  %v1449_v63 = vmul.f32 -1.442695, %v413_v61 }
 0x3f4   :  { %1781 = vpow2.f32 %v1449_v63 }
 0x3fc   :  { %v1780_v62 = vpop.eup %1779 }
 0x3fd   :  { %426 = vrot.lane.b32.xlu0 %v1780_v62, %s1941_s1 }
 0x3fe   :  { %v1782_v0 = vpop.eup %1781 }
 0x3ff   :  { %v417_v1 = vadd.f32 1.0, %v1782_v0 }
 0x401   :  { %1783 = vrcp.f32 %v417_v1 }
 0x40b   :  { %v1784_v3 = vpop.eup %1783 }
 0x40c   :  { %v424_v8 = vmul.f32 %v1784_v3, %v422_v7 }
 0x46f   :  { %v427_v4 = vpop.permute.xlu0 %426 }
 0x470   :  { %v429_v6 = vmul.f32 %v1784_v3, %v427_v4 }
 0x472   :  { %431 = vrot.lane.b32.xlu1 %v429_v6, %s1941_s1 }
 0x4e4   :  { %v432_v9 = vpop.permute.xlu1 %431 }
 0x4e5   :  { %v434_v10 = vadd.f32 %v432_v9, %v424_v8 }
 0x4e7   :  { %1785 = vtanh.f32 %v434_v10  ;;  %v529_v30 = vrot.slane %v434_v10, 6 }
 0x4f1   :  { %v1786_v11 = vpop.eup %1785 }
 0x4f2   :  { %437 = vrot.lane.b32.xlu0 %v1786_v11, %s1941_s1 }
 0x564   :  { %v438_v13 = vpop.permute.xlu0 %437 }
 0x565   :  { %v440_v14 = vmul.f32 %v1784_v3, %v438_v13 }
 0x567   :  { %v442_v15 = vrot.slane %v440_v14, 2 }
 0x569   :  { %443 = vrot.lane.b32.xlu1 %v442_v15, %s1949_s2 }
 0x5db   :  { %v444_v16 = vpop.permute.xlu1 %443 }
 0x5dc   :  { %1574 = vmatmul.mubr.msk.f32.vlgmr.msra.gmra.mrb[4].mxu1 %vm236_vm2, %v444_v16 }
 0x5dd   :  { %1709 = vmatpush3.bf16.msra.mxu1 %v2085_v12  ;;  %1595 = vmatprep.mubr.msk.f32.mxu1 %vm1947_vm0, %v1948_v5 }
 0x5de   :  { %1710 = vmatprep.subr.bf16.mxu1 %v1945_v2 }
 0x5e1   :  { %1712 = vmatpush3.bf16.msra.mxu1 %v2095_v26 }
 0x5e2   :  { %1719 = vmatprep.subr.bf16.mxu1 %v1945_v2 }
 0x6af   :  { %v513_v17 = vpop.f32.mrb[4].mxu1 }
 0x6b0   :  { %v518_v18 = vrot.slane %v513_v17, 4  ;;  %v1575_v19 = vpop.f32.mrb[5].mxu1 }
 0x6b2   :  { %v520_v20 = vadd.f32 %v518_v18, %v2120_v42 }
 0x6b4   :  { %1787 = vtanh.f32 %v520_v20  ;;  %v1451_v22 = vmul.f32 -1.442695, %v520_v20 }
 0x6b6   :  { %1789 = vpow2.f32 %v1451_v22 }
 0x6be   :  { %v1788_v21 = vpop.eup %1787 }
 0x6bf   :  { %533 = vrot.lane.b32.xlu0 %v1788_v21, %s1941_s1 }
 0x6c0   :  { %v1790_v23 = vpop.eup %1789 }
 0x6c1   :  { %v524_v24 = vadd.f32 1.0, %v1790_v23 }
 0x6c3   :  { %1791 = vrcp.f32 %v524_v24 }
 0x6cd   :  { %v1792_v25 = vpop.eup %1791 }
 0x6ce   :  { %v531_v31 = vmul.f32 %v1792_v25, %v529_v30 }
 0x731   :  { %v534_v27 = vpop.permute.xlu0 %533 }
 0x732   :  { %v536_v29 = vmul.f32 %v1792_v25, %v534_v27 }
 0x734   :  { %538 = vrot.lane.b32.xlu1 %v536_v29, %s1941_s1 }
 0x7a6   :  { %v539_v32 = vpop.permute.xlu1 %538 }
 0x7a7   :  { %v541_v33 = vadd.f32 %v539_v32, %v531_v31 }
 0x7a9   :  { %1793 = vtanh.f32 %v541_v33  ;;  %v636_v52 = vrot.slane %v541_v33, 6 }
 0x7b3   :  { %v1794_v34 = vpop.eup %1793 }
 0x7b4   :  { %544 = vrot.lane.b32.xlu0 %v1794_v34, %s1941_s1 }
 0x826   :  { %v545_v35 = vpop.permute.xlu0 %544 }
 0x827   :  { %v547_v36 = vmul.f32 %v1792_v25, %v545_v35 }
 0x829   :  { %v549_v37 = vrot.slane %v547_v36, 4 }
 0x82b   :  { %550 = vrot.lane.b32.xlu1 %v549_v37, %s1949_s2 }
 0x89d   :  { %v551_v38 = vpop.permute.xlu1 %550 }
 0x89e   :  { %1585 = vmatmul.mubr.msk.f32.vlgmr.msra.gmra.mrb[2].mxu0 %vm236_vm2, %v551_v38 }
 0x89f   :  { %1715 = vmatpush3.bf16.msra.mxu0 %v2085_v12  ;;  %1606 = vmatprep.mubr.msk.f32.mxu0 %vm1947_vm0, %v1948_v5 }
 0x8a0   :  { %1716 = vmatprep.subr.bf16.mxu0 %v1945_v2 }
 0x8a3   :  { %1718 = vmatpush3.bf16.msra.mxu0 %v2095_v26 }
 0x8a4   :  { %1725 = vmatprep.subr.bf16.mxu0 %v1945_v2 }
 0x971   :  { %v620_v39 = vpop.f32.mrb[2].mxu0 }
 0x972   :  { %v625_v41 = vrot.slane %v620_v39, 2  ;;  %v1586_v43 = vpop.f32.mrb[3].mxu0 }
 0x974   :  { %v627_v44 = vadd.f32 %v625_v41, %v2120_v42 }
 0x976   :  { %1795 = vtanh.f32 %v627_v44  ;;  %v1453_v46 = vmul.f32 -1.442695, %v627_v44 }
 0x978   :  { %1797 = vpow2.f32 %v1453_v46 }
 0x980   :  { %v1796_v45 = vpop.eup %1795 }
 0x981   :  { %640 = vrot.lane.b32.xlu0 %v1796_v45, %s1941_s1 }
 0x982   :  { %v1798_v47 = vpop.eup %1797 }
 0x983   :  { %v631_v48 = vadd.f32 1.0, %v1798_v47 }
 0x985   :  { %1799 = vrcp.f32 %v631_v48 }
 0x98f   :  { %v1800_v49 = vpop.eup %1799 }
 0x990   :  { %v638_v53 = vmul.f32 %v1800_v49, %v636_v52 }
 0x9f3   :  { %v641_v50 = vpop.permute.xlu0 %640 }
 0x9f4   :  { %v643_v51 = vmul.f32 %v1800_v49, %v641_v50 }
 0x9f6   :  { %645 = vrot.lane.b32.xlu1 %v643_v51, %s1941_s1 }
 0xa68   :  { %v646_v54 = vpop.permute.xlu1 %645 }
 0xa69   :  { %v648_v55 = vadd.f32 %v646_v54, %v638_v53 }
 0xa6b   :  { %1801 = vtanh.f32 %v648_v55  ;;  %v740_v8 = vrot.slane %v648_v55, 6  ;;  %v1079_v55 = vld [vmem:[%s2276_s4] sm:$0xff] }
 0xa75   :  { %v1802_v42 = vpop.eup %1801 }
 0xa76   :  { %651 = vrot.lane.b32.xlu0 %v1802_v42, %s1941_s1  ;;  %v1080_v42 = vld [vmem:[%s2276_s4 + $0x8] sm:$0xff] }
 0xae8   :  { %v652_v56 = vpop.permute.xlu0 %651 }
 0xae9   :  { %v654_v57 = vmul.f32 %v1800_v49, %v652_v56  ;;  %v1732_v56 = vpack.c.bf16 %v1080_v42, %v1079_v55  ;;  %v1352_v55 = vld [vmem:[%s2281_s9 + $0x30] sm:$0xff]  ;;  %v1353_v42 = vld [vmem:[%s2281_s9 + $0x38] sm:$0xff] }
 0xaeb   :  { %v656_v58 = vrot.slane %v654_v57, 6 }
 0xaed   :  { %657 = vrot.lane.b32.xlu1 %v656_v58, %s1949_s2 }
 0xb5f   :  { %v658_v59 = vpop.permute.xlu1 %657 }
 0xb60   :  { %1596 = vmatmul.mubr.msk.f32.vlgmr.msra.gmra.mrb[6].mxu1 %vm236_vm2, %v658_v59 }
 0xb61   :  { %1721 = vmatpush3.bf16.msra.mxu1 %v2085_v12  ;;  %1617 = vmatprep.mubr.msk.f32.mxu1 %vm1947_vm0, %v1948_v5 }
 0xb62   :  { %1722 = vmatprep.subr.bf16.mxu1 %v1945_v2 }
 0xb65   :  { %1724 = vmatpush3.bf16.msra.mxu1 %v2095_v26 }
 0xb66   :  { %1731 = vmatprep.subr.bf16.mxu1 %v1945_v2 }
 0xc33   :  { %v727_v60 = vpop.f32.mrb[6].mxu1 }
 0xc34   :  { %v731_v61 = vadd.f32 %v727_v60, %v2118_v40  ;;  %v1597_v62 = vpop.f32.mrb[7].mxu1 }
 0xc36   :  { %1803 = vtanh.f32 %v731_v61  ;;  %v1455_v0 = vmul.f32 -1.442695, %v731_v61 }
 0xc38   :  { %1805 = vpow2.f32 %v1455_v0 }
 0xc40   :  { %v1804_v63 = vpop.eup %1803 }
 0xc41   :  { %744 = vrot.lane.b32.xlu0 %v1804_v63, %s1941_s1 }
 0xc42   :  { %v1806_v1 = vpop.eup %1805 }
 0xc43   :  { %v735_v3 = vadd.f32 1.0, %v1806_v1 }
 0xc45   :  { %1807 = vrcp.f32 %v735_v3 }
 0xc4f   :  { %v1808_v4 = vpop.eup %1807 }
 0xc50   :  { %v742_v9 = vmul.f32 %v1808_v4, %v740_v8 }
 0xcb3   :  { %v745_v6 = vpop.permute.xlu0 %744 }
 0xcb4   :  { %v747_v7 = vmul.f32 %v1808_v4, %v745_v6 }
 0xcb6   :  { %749 = vrot.lane.b32.xlu1 %v747_v7, %s1941_s1 }
 0xd28   :  { %v750_v10 = vpop.permute.xlu1 %749 }
 0xd29   :  { %v752_v11 = vadd.f32 %v750_v10, %v742_v9 }
 0xd2b   :  { %1809 = vtanh.f32 %v752_v11 }
 0xd35   :  { %v1810_v13 = vpop.eup %1809 }
 0xd36   :  { %755 = vrot.lane.b32.xlu0 %v1810_v13, %s1941_s1 }
 0xda8   :  { %v756_v14 = vpop.permute.xlu0 %755 }
 0xda9   :  { %v758_v15 = vmul.f32 %v1808_v4, %v756_v14 }
 0xdab   :  { %760 = vrot.lane.b32.xlu1 %v758_v15, %s1949_s2 }
 0xe1d   :  { %v761_v16 = vpop.permute.xlu1 %760 }
 0xe1e   :  { %1607 = vmatmul.mubr.msk.f32.vlgmr.msra.gmra.mrb[4].mxu0 %vm236_vm2, %v761_v16 }
 0xe1f   :  { %1727 = vmatpush3.bf16.msra.mxu0 %v2085_v12  ;;  %1628 = vmatprep.mubr.msk.f32.mxu0 %vm1947_vm0, %v1948_v5 }
 0xe20   :  { %1728 = vmatprep.subr.bf16.mxu0 %v1945_v2 }
 0xe23   :  { %1730 = vmatpush3.bf16.msra.mxu0 %v2095_v26  ;;  %v846_v26 = vrot.slane %v752_v11, 6 }
 0xe24   :  { %1734 = vmatprep.subr.bf16.mxu0 %v1945_v2 }
 0xef1   :  { %v830_v17 = vpop.f32.mrb[4].mxu0 }
 0xef2   :  { %v835_v18 = vrot.slane %v830_v17, 6  ;;  %v1608_v19 = vpop.f32.mrb[5].mxu0 }
 0xef4   :  { %v837_v20 = vadd.f32 %v835_v18, %v2118_v40 }
 0xef6   :  { %1811 = vtanh.f32 %v837_v20  ;;  %v1457_v22 = vmul.f32 -1.442695, %v837_v20  ;;  %v1182_v20 = vld [vmem:[#allocation8] sm:$0xff] }
 0xef8   :  { %1813 = vpow2.f32 %v1457_v22 }
 0xf00   :  { %v1812_v21 = vpop.eup %1811 }
 0xf01   :  { %850 = vrot.lane.b32.xlu0 %v1812_v21, %s1941_s1  ;;  %v1183_v21 = vld [vmem:[#allocation8 + $0x8] sm:$0xff] }
 0xf02   :  { %v1814_v12 = vpop.eup %1813  ;;  %v1735_v22 = vpack.c.bf16 %v1183_v21, %v1182_v20 }
 0xf03   :  { %v841_v23 = vadd.f32 1.0, %v1814_v12 }
 0xf05   :  { %1815 = vrcp.f32 %v841_v23 }
 0xf0f   :  { %v1816_v24 = vpop.eup %1815 }
 0xf10   :  { %v848_v29 = vmul.f32 %v1816_v24, %v846_v26 }
 0xf73   :  { %v851_v25 = vpop.permute.xlu0 %850 }
 0xf74   :  { %v853_v27 = vmul.f32 %v1816_v24, %v851_v25  ;;  %v1184_v25 = vld [vmem:[#allocation8 + $0x10] sm:$0xff] }
 0xf76   :  { %855 = vrot.lane.b32.xlu1 %v853_v27, %s1941_s1  ;;  %v1185_v27 = vld [vmem:[#allocation8 + $0x18] sm:$0xff] }
 0xfe8   :  { %v856_v30 = vpop.permute.xlu1 %855 }
 0xfe9   :  { %v858_v31 = vadd.f32 %v856_v30, %v848_v29  ;;  %v1738_v29 = vpack.c.bf16 %v1185_v27, %v1184_v25 }
 0xfeb   :  { %1817 = vtanh.f32 %v858_v31  ;;  %v953_v50 = vrot.slane %v858_v31, 6  ;;  %v1178_v31 = vld [vmem:[%s2278_s6] sm:$0xff] }
 0xff5   :  { %v1818_v32 = vpop.eup %1817 }
 0xff6   :  { %861 = vrot.lane.b32.xlu0 %v1818_v32, %s1941_s1  ;;  %v1179_v32 = vld [vmem:[%s2278_s6 + $0x8] sm:$0xff] }
0x1068   :  { %v862_v33 = vpop.permute.xlu0 %861 }
0x1069   :  { %v864_v34 = vmul.f32 %v1816_v24, %v862_v33  ;;  %v1180_v33 = vld [vmem:[%s2278_s6 + $0x10] sm:$0xff] }
0x106b   :  { %v866_v35 = vrot.slane %v864_v34, 2  ;;  %v1741_v34 = vpack.c.bf16 %v1179_v32, %v1178_v31 }
0x106d   :  { %867 = vrot.lane.b32.xlu1 %v866_v35, %s1949_s2  ;;  %v1181_v35 = vld [vmem:[%s2278_s6 + $0x18] sm:$0xff] }
0x10df   :  { %v868_v36 = vpop.permute.xlu1 %867 }
0x10e0   :  { %1618 = vmatmul.mubr.msk.f32.vlgmr.msra.gmra.mrb[8].mxu1 %vm236_vm2, %v868_v36  ;;  %v1744_v36 = vpack.c.bf16 %v1181_v35, %v1180_v33 }
0x10e1   :  { %1635 = vmatprep.mubr.msk.f32.mxu1 %vm1947_vm0, %v1948_v5  ;;  %1733 = vmatpush3.bf16.msra.mxu1 %v1732_v56  ;;  %v1756_v56 = vpack.c.bf16 %v1353_v42, %v1352_v55 }
0x10e2   :  { %1740 = vmatprep.subr.bf16.mxu1 %v1945_v2 }
0x10e4   :  { %1636 = vmatmul.mubr.msk.f32.vlgmr.msra.gmra.mrb[10].mxu1 %vm152_vm1, %v2097_v28  ;;  %v1462_v28 = vld [vmem:[%s2277_s5] ss:$0 sm:$0xff] }
0x10e5   :  { %1657 = vmatprep.mubr.msk.f32.mxu1 %vm1947_vm0, %v1948_v5  ;;  %1742 = vmatpush3.bf16.msra.mxu1 %v1741_v34 }
0x10e6   :  { %1743 = vmatprep.subr.bf16.mxu1 %v1945_v2 }
0x10e9   :  { %1745 = vmatpush3.bf16.msra.mxu1 %v1744_v36 }
0x11b3   :  { %v937_v37 = vpop.f32.mrb[8].mxu1 }
0x11b4   :  { %v942_v38 = vrot.slane %v937_v37, 4  ;;  %v1619_v39 = vpop.f32.mrb[9].mxu1 }
0x11b6   :  { %v944_v41 = vadd.f32 %v942_v38, %v2118_v40 }
0x11b7   :  { %v1156_v61 = vpop.f32.mrb[10].mxu1 }
0x11b8   :  { %1819 = vtanh.f32 %v944_v41  ;;  %v1459_v44 = vmul.f32 -1.442695, %v944_v41  ;;  %v1637_v62 = vpop.f32.mrb[11].mxu1  ;;  %v1157_v4 = vadd.f32 %v1462_v28, %v1156_v61  ;;  %v1468_v28 = vld [vmem:[#allocation2] ss:$0 sm:$0xff] }
0x11ba   :  { %1821 = vpow2.f32 %v1459_v44  ;;  %v1464_v9 = vmul.f32 -1.442695, %v1157_v4 }
0x11c2   :  { %v1820_v43 = vpop.eup %1819 }
0x11c3   :  { %957 = vrot.lane.b32.xlu0 %v1820_v43, %s1941_s1 }
0x11c4   :  { %v1822_v45 = vpop.eup %1821 }
0x11c5   :  { %v948_v46 = vadd.f32 1.0, %v1822_v45 }
0x11c7   :  { %1823 = vrcp.f32 %v948_v46  ;;  %v1346_v46 = vld [vmem:[%s2281_s9] sm:$0xff] }
0x11d1   :  { %v1824_v47 = vpop.eup %1823 }
0x11d2   :  { %v955_v51 = vmul.f32 %v1824_v47, %v953_v50  ;;  %v1349_v50 = vld [vmem:[%s2281_s9 + $0x18] sm:$0xff] }
0x1235   :  { %v958_v48 = vpop.permute.xlu0 %957 }
0x1236   :  { %v960_v49 = vmul.f32 %v1824_v47, %v958_v48  ;;  %v1348_v48 = vld [vmem:[%s2281_s9 + $0x10] sm:$0xff] }
0x1238   :  { %962 = vrot.lane.b32.xlu1 %v960_v49, %s1941_s1 }
0x12aa   :  { %v963_v52 = vpop.permute.xlu1 %962 }
0x12ab   :  { %v965_v53 = vadd.f32 %v963_v52, %v955_v51  ;;  %v1750_v51 = vpack.c.bf16 %v1349_v50, %v1348_v48  ;;  %v1350_v52 = vld [vmem:[%s2281_s9 + $0x20] sm:$0xff] }
0x12ad   :  { %1825 = vtanh.f32 %v965_v53  ;;  %v1060_v23 = vrot.slane %v965_v53, 6  ;;  %v1351_v53 = vld [vmem:[%s2281_s9 + $0x28] sm:$0xff] }
0x12b7   :  { %v1826_v54 = vpop.eup %1825 }
0x12b8   :  { %968 = vrot.lane.b32.xlu0 %v1826_v54, %s1941_s1  ;;  %v1753_v54 = vpack.c.bf16 %v1351_v53, %v1350_v52 }
0x132a   :  { %v969_v57 = vpop.permute.xlu0 %968 }
0x132b   :  { %v971_v58 = vmul.f32 %v1824_v47, %v969_v57  ;;  %v1347_v47 = vld [vmem:[%s2281_s9 + $0x8] sm:$0xff] }
0x132c   :  { %v1747_v49 = vpack.c.bf16 %v1347_v47, %v1346_v46 }
0x132d   :  { %v973_v59 = vrot.slane %v971_v58, 4 }
0x132f   :  { %974 = vrot.lane.b32.xlu1 %v973_v59, %s1949_s2 }
0x13a1   :  { %v975_v60 = vpop.permute.xlu1 %974 }
0x13a2   :  { %1629 = vmatmul.mubr.msk.f32.vlgmr.msra.gmra.mrb[6].mxu0 %vm236_vm2, %v975_v60  ;;  %v1467_v60 = vld [vmem:[%s2280_s8] ss:$0 sm:$0xff] }
0x13a3   :  { %1646 = vmatprep.mubr.msk.f32.mxu0 %vm1947_vm0, %v1948_v5  ;;  %1736 = vmatpush3.bf16.msra.mxu0 %v1735_v22 }
0x13a4   :  { %1737 = vmatprep.subr.bf16.mxu0 %v1945_v2 }
0x13a7   :  { %1739 = vmatpush3.bf16.msra.mxu0 %v1738_v29 }
0x13a8   :  { %1746 = vmatprep.subr.bf16.mxu0 %v1945_v2 }
0x1475   :  { %v1044_v63 = vpop.f32.mrb[6].mxu0 }
0x1476   :  { %v1049_v0 = vrot.slane %v1044_v63, 2  ;;  %v1630_v1 = vpop.f32.mrb[7].mxu0 }
0x1478   :  { %v1051_v3 = vadd.f32 %v1049_v0, %v2118_v40 }
0x147a   :  { %1827 = vtanh.f32 %v1051_v3  ;;  %v1461_v8 = vmul.f32 -1.442695, %v1051_v3 }
0x147b   :  { %1829 = vtanh.f32 %v1157_v4 }
0x147c   :  { %1831 = vpow2.f32 %v1461_v8 }
0x147d   :  { %1833 = vpow2.f32 %v1464_v9 }
0x1484   :  { %v1828_v6 = vpop.eup %1827 }
0x1485   :  { %1064 = vrot.lane.b32.xlu0 %v1828_v6, %s1941_s1  ;;  %v1830_v7 = vpop.eup %1829 }
0x1486   :  { %v1832_v10 = vpop.eup %1831 }
0x1487   :  { %v1834_v11 = vpop.eup %1833  ;;  %v1055_v13 = vadd.f32 1.0, %v1832_v10 }
0x1488   :  { %v1163_v14 = vadd.f32 1.0, %v1834_v11 }
0x1489   :  { %1168 = vrot.lane.b32.xlu0 %v1830_v7, %s1941_s1  ;;  %1835 = vrcp.f32 %v1055_v13 }
0x148a   :  { %1837 = vrcp.f32 %v1163_v14 }
0x1493   :  { %v1836_v40 = vpop.eup %1835 }
0x1494   :  { %v1838_v17 = vpop.eup %1837  ;;  %v1062_v24 = vmul.f32 %v1836_v40, %v1060_v23 }
0x14f7   :  { %v1065_v15 = vpop.permute.xlu0 %1064 }
0x14f8   :  { %v1067_v16 = vmul.f32 %v1836_v40, %v1065_v15 }
0x14fa   :  { %1069 = vrot.lane.b32.xlu1 %v1067_v16, %s1941_s1 }
0x14fb   :  { %v1169_v18 = vpop.permute.xlu0 %1168 }
0x14fc   :  { %v1171_v19 = vmul.f32 %v1838_v17, %v1169_v18 }
0x14fe   :  { %1839 = vtanh.f32 %v1171_v19 }
0x1508   :  { %v1840_v12 = vpop.eup %1839 }
0x1509   :  { %1174 = vrot.lane.b32.xlu0 %v1840_v12, %s1949_s2 }
0x156c   :  { %v1070_v26 = vpop.permute.xlu1 %1069 }
0x156d   :  { %v1072_v30 = vadd.f32 %v1070_v26, %v1062_v24 }
0x156f   :  { %1841 = vtanh.f32 %v1072_v30 }
0x1579   :  { %v1842_v37 = vpop.eup %1841 }
0x157a   :  { %1075 = vrot.lane.b32.xlu1 %v1842_v37, %s1941_s1 }
0x157b   :  { %v1175_v38 = vpop.permute.xlu0 %1174 }
0x157c   :  { %v1177_v39 = vmul.f32 %v1838_v17, %v1175_v38 }
0x157e   :  { %1187 = vrot.lane.b32.xlu1 %v1177_v39, %s1949_s2 }
0x15ec   :  { %v1076_v41 = vpop.permute.xlu1 %1075 }
0x15ed   :  { %v1078_v43 = vmul.f32 %v1836_v40, %v1076_v41 }
0x15ef   :  { %v1262_v44 = vrot.slane %v1078_v43, 6 }
0x15f0   :  { %v1188_v45 = vpop.permute.xlu1 %1187 }
0x15f1   :  { %1263 = vrot.lane.b32.xlu0 %v1262_v44, %s1949_s2  ;;  %1647 = vmatmul.mubr.msk.f32.vlgmr.msra.gmra.mrb[8].mxu0 %vm236_vm2, %v1188_v45 }
0x15f2   :  { %1676 = vmatprep.mubr.msk.f32.mxu0 %vm1947_vm0, %v1948_v5  ;;  %1748 = vmatpush3.bf16.msra.mxu0 %v1747_v49 }
0x15f3   :  { %1749 = vmatprep.subr.bf16.mxu0 %v1945_v2 }
0x15f6   :  { %1751 = vmatpush3.bf16.msra.mxu0 %v1750_v51 }
0x15f7   :  { %1752 = vmatprep.subr.bf16.mxu0 %v1945_v2 }
0x15fa   :  { %1754 = vmatpush3.bf16.msra.mxu0 %v1753_v54 }
0x15fb   :  { %1755 = vmatprep.subr.bf16.mxu0 %v1945_v2 }
0x15fe   :  { %1757 = vmatpush3.bf16.msra.mxu0 %v1756_v56 }
0x1663   :  { %v1264_v5 = vpop.permute.xlu0 %1263 }
0x1664   :  { %1658 = vmatmul.mubr.msk.f32.vlgmr.msra.gmra.mrb[12].mxu1 %vm236_vm2, %v1264_v5 }
0x16c4   :  { %v1257_v57 = vpop.f32.mrb[8].mxu0 }
0x16c5   :  { %v1648_v58 = vpop.f32.mrb[9].mxu0 }
0x1737   :  { %v1333_v59 = vpop.f32.mrb[12].mxu1 }
0x1738   :  { %v1334_v61 = vadd.f32 %v1333_v59, %v1257_v57  ;;  %v1659_v62 = vpop.f32.mrb[13].mxu1 }
0x173a   :  { %v1344_v2 = vadd.f32 %v1467_v60, %v1334_v61 }
0x173c   :  { %v1345_v63 = vmax.f32 %v1344_v2, 0.0 }
0x173e   :  { %1677 = vmatmul.mubr.msk.f32.vlgmr.msra.gmra.mrb[10].mxu0 %vm1361_vm3, %v1345_v63 }
0x1811   :  { %v1431_v0 = vpop.f32.mrb[10].mxu0 }
0x1812   :  { %v1432_v1 = vadd.f32 %v1468_v28, %v1431_v0  ;;  %v1678_v3 = vpop.f32.mrb[11].mxu0 }
0x1814   :  { %1436 = vst.msk [vmem:[%s2283_s11] sm:$0x3] %vm1435_vm4, %v1432_v1 }
0x1815   :  { %1441 = vsyncpa [#allocation4], 1 }
0x1816   :  { %1442 = vsyncpa [#allocation6], 1 }
0x1817   :  { %1443 = vsyncpa [#allocation9], 1 }

</bundles_post_ra>
